<compile_context>
chip_gen: v7x
topology: tpu7x:2x2x1
jax: 0.10.0
libtpu: 0.0.40
codegen_flags: <defaults>
</compile_context>

<pallas_src>
import functools

import jax
import jax.numpy as jnp
from jax.experimental import pallas as pl
from jax.experimental.pallas import tpu as pltpu


def _round_up(x, m):
    return ((x + m - 1) // m) * m


def _sublane_align(dtype):
    # Native packed sublane counts: f32 -> 8, bf16 -> 16, int8/fp8 -> 32.
    return {4: 8, 2: 16, 1: 32}.get(jnp.dtype(dtype).itemsize, 8)


def _vmem_capacity_bytes():
    try:
        return int(pltpu.get_tpu_info().vmem_capacity_bytes)
    except Exception:
        return 64 << 20  # conservative fallback (v7x per-TensorCore VMEM)


def _tile_caps(vmem_cap_bytes):
    # v5e / v6e: 128 MiB VMEM per TensorCore; v7x: 64 MiB. Double-buffered f32 footprint
    # at these caps is ~18 MiB (128-MiB chips) / ~12 MiB (v7x).
    if vmem_cap_bytes >= (100 << 20):
        return 512, 1024, 1024  # tm, tn, tk caps
    return 512, 1024, 512


def _epilogue(acc_f32, scale_ref, b_ref, out_dtype, activate):
    # Fold the weight-norm scale into the output, add bias, activate (all in f32).
    y = acc_f32 * scale_ref[0, 0] + b_ref[...].astype(jnp.float32)
    if activate == "relu":
        y = jnp.maximum(y, 0.0)
    elif activate == "sigmoid":
        y = jax.nn.sigmoid(y)
    elif activate == "tanh":
        y = jnp.tanh(y)
    return y.astype(out_dtype)


def _fcnet_kernel_single_k(x_ref, w_ref, scale_ref, b_ref, o_ref, *, activate):
    # Whole contraction fits in one K tile: no accumulator scratch, direct fused write.
    acc = jnp.dot(x_ref[...], w_ref[...], preferred_element_type=jnp.float32)
    o_ref[...] = _epilogue(acc, scale_ref, b_ref, o_ref.dtype, activate)


def _fcnet_kernel_multi_k(x_ref, w_ref, scale_ref, b_ref, o_ref, acc_ref, *, activate):
    k = pl.program_id(2)

    @pl.when(k == 0)
    def _():
        acc_ref[...] = jnp.zeros_like(acc_ref)

    # x_ref: [tm, tk], w_ref (pre-transposed V): [tk, tn] -> canonical MXU matmul,
    # no in-kernel transpose, f32 accumulation.
    acc_ref[...] += jnp.dot(x_ref[...], w_ref[...], preferred_element_type=jnp.float32)

    @pl.when(k == pl.num_programs(2) - 1)
    def _():
        o_ref[...] = _epilogue(acc_ref[...], scale_ref, b_ref, o_ref.dtype, activate)


def fcnet_prepare_params(v, g, b, *, compute_dtype=None, _tn=None, _tk=None):
    """One-time parameter preparation for FCNet (call once, reuse every forward).

    v: [out_size, in_size] (nn.Linear weight V under weight_norm(dim=None)),
    g: scalar gain (any shape reshapeable to ()), b: [out_size] or [1, out_size].
    """
    out_size, in_size = v.shape
    compute_dtype = jnp.dtype(compute_dtype if compute_dtype is not None else v.dtype)

    vmem_cap = _vmem_capacity_bytes()
    tm_cap, tn_cap, tk_cap = _tile_caps(vmem_cap)

    # N/K tiles 256-aligned (full 256x256 MXU occupancy on v6e/v7x); full-K tile whenever
    # in_size fits under the cap (single K step -> no accumulator read-modify-write).
    tn = _tn if _tn is not None else min(tn_cap, _round_up(out_size, 256))
    tk = _tk if _tk is not None else min(tk_cap, _round_up(in_size, 256))
    assert tn % 128 == 0 and tk % 128 == 0
    Np = _round_up(out_size, tn)
    Kp = _round_up(in_size, tk)

    # Hoisted weight-norm scale: W = g * V / ||V||_F  =>  y = (x @ V^T) * (g/||V||) + b.
    # (All-zero V -> scale = NaN, matching the PyTorch weight_norm edge case.)
    v32 = v.astype(jnp.float32)
    scale = (jnp.asarray(g, jnp.float32).reshape(()) /
             jnp.sqrt(jnp.sum(v32 * v32))).reshape(1, 1)

    # Pre-transposed, pre-padded weight: [Kp, Np] in the compute dtype.
    w_t = jnp.pad(v.T.astype(compute_dtype),
                  ((0, Kp - in_size), (0, Np - out_size)))
    b_p = jnp.pad(jnp.asarray(b, jnp.float32).reshape(1, out_size),
                  ((0, 0), (0, Np - out_size)))

    return dict(w_t=w_t, b_p=b_p, scale=scale,
                in_size=in_size, out_size=out_size,
                tn=int(tn), tk=int(tk), Np=int(Np), Kp=int(Kp),
                compute_dtype=compute_dtype,
                tm_cap=int(tm_cap), vmem_cap=int(vmem_cap))


def fcnet_forward(x, params, *, activate=None, _tm=None):
    """Pallas forward pass of FCNet: y = act((x @ V^T) * g/||V||_F + b).

    x: [B, in_size]; params from fcnet_prepare_params. Returns [B, out_size] in x.dtype.
    """
    activate = activate.lower() if activate is not None else None
    B, in_size = x.shape
    assert in_size == params["in_size"]

    cdt = params["compute_dtype"]
    out_size, Np, Kp = params["out_size"], params["Np"], params["Kp"]
    tn, tk = params["tn"], params["tk"]

    tm = _tm if _tm is not None else min(params["tm_cap"],
                                         _round_up(B, _sublane_align(cdt)))
    assert tm % 8 == 0
    Mp = _round_up(B, tm)

    grid_m, grid_n, grid_k = Mp // tm, Np // tn, Kp // tk

    # Tiny batch: if the parallel grid would be 1x1, halve the N tile so v7x's two
    # TensorCores both get a block (harmless on single-TC chips).
    if grid_m == 1 and grid_n == 1 and tn % 512 == 0:
        tn //= 2
        grid_n = Np // tn

    out_dtype = x.dtype
    in_bytes = jnp.dtype(cdt).itemsize
    out_bytes = jnp.dtype(out_dtype).itemsize

    # Zero padding is exact for the matmul (padded K contributes 0; padded M/N are
    # sliced off) and keeps the output lane-dense (unmasked stores).
    x_p = jnp.pad(x.astype(cdt), ((0, Mp - B), (0, Kp - in_size)))

    # Small-batch weight-streaming regime: deepen the weight prefetch pipeline.
    deep_w_prefetch = (tm <= 64) and (grid_n * grid_k >= 3)

    def _w_spec(index_map):
        if deep_w_prefetch:
            return pl.BlockSpec((tk, tn), index_map, pipeline_mode=pl.Buffered(3))
        return pl.BlockSpec((tk, tn), index_map)

    if grid_k == 1:
        grid = (grid_m, grid_n)
        kernel = functools.partial(_fcnet_kernel_single_k, activate=activate)
        in_specs = [
            pl.BlockSpec((tm, tk), lambda i, j: (i, 0)),    # x tile
            _w_spec(lambda i, j: (0, j)),                   # V^T tile (canonical RHS)
            pl.BlockSpec(memory_space=pltpu.SMEM),          # weight-norm scale (scalar)
            pl.BlockSpec((1, tn), lambda i, j: (0, j)),     # bias tile
        ]
        out_specs = pl.BlockSpec((tm, tn), lambda i, j: (i, j))
        scratch_shapes = []
        dim_sem = ("parallel", "parallel")
        acc_bytes = 0
    else:
        grid = (grid_m, grid_n, grid_k)
        kernel = functools.partial(_fcnet_kernel_multi_k, activate=activate)
        in_specs = [
            pl.BlockSpec((tm, tk), lambda i, j, k: (i, k)),
            _w_spec(lambda i, j, k: (k, j)),
            pl.BlockSpec(memory_space=pltpu.SMEM),
            pl.BlockSpec((1, tn), lambda i, j, k: (0, j)),
        ]
        out_specs = pl.BlockSpec((tm, tn), lambda i, j, k: (i, j))
        scratch_shapes = [pltpu.VMEM((tm, tn), jnp.float32)]
        dim_sem = ("parallel", "parallel", "arbitrary")
        acc_bytes = tm * tn * 4

    # Scoped-VMEM limit from the actual buffered footprint (+headroom): unlocks bigger
    # tiles on v5e (16 MiB scoped default) and stays safely under v7x's 64 MiB.
    w_bufs = 3 if deep_w_prefetch else 2
    footprint = (2 * tm * tk * in_bytes + w_bufs * tk * tn * in_bytes
                 + 2 * tm * tn * out_bytes + acc_bytes + 2 * tn * 4)
    vmem_limit = max(32 << 20, footprint + (8 << 20))
    vmem_limit = min(vmem_limit, max(params["vmem_cap"] - (8 << 20), 16 << 20))

    # bytes_accessed counts grid revisits: x re-streamed per N block, W per M block.
    cost = pl.CostEstimate(
        flops=2 * Mp * Np * Kp,
        transcendentals=Mp * Np if activate in ("sigmoid", "tanh") else 0,
        bytes_accessed=int(grid_n * Mp * Kp * in_bytes
                           + grid_m * Np * Kp * in_bytes
                           + grid_m * grid_k * Np * 4
                           + Mp * Np * out_bytes),
    )

    out_p = pl.pallas_call(
        kernel,
        out_shape=jax.ShapeDtypeStruct((Mp, Np), out_dtype),
        grid_spec=pltpu.PrefetchScalarGridSpec(
            num_scalar_prefetch=0,
            grid=grid,
            in_specs=in_specs,
            out_specs=out_specs,
            scratch_shapes=scratch_shapes,
        ),
        compiler_params=pltpu.CompilerParams(
            dimension_semantics=dim_sem,
            vmem_limit_bytes=int(vmem_limit),
        ),
        cost_estimate=cost,
    )(x_p, params["w_t"], params["scale"], params["b_p"])

    return out_p[:B, :out_size]


def fcnet_reference(x, v, g, b, *, activate=None):
    activate = activate.lower() if activate is not None else None
    norm = jnp.sqrt(jnp.sum(v.astype(jnp.float32) ** 2))
    w = v.astype(jnp.float32) * (jnp.asarray(g, jnp.float32).reshape(()) / norm)
    y = x.astype(jnp.float32) @ w.T + jnp.asarray(b, jnp.float32).reshape(1, -1)
    if activate == "relu":
        y = jnp.maximum(y, 0.0)
    elif activate == "sigmoid":
        y = jax.nn.sigmoid(y)
    elif activate == "tanh":
        y = jnp.tanh(y)
    return y


if __name__ == "__main__":
    key = jax.random.PRNGKey(0)

    # --- Test 1: shapes consistent with FCNet(in_size=32, out_size=16, activate='relu').
    B, in_size, out_size = 8, 32, 16
    kx, kv, kb = jax.random.split(key, 3)
    x = jax.random.normal(kx, (B, in_size), dtype=jnp.float32)
    v = jax.random.normal(kv, (out_size, in_size), dtype=jnp.float32) * 0.1
    g = jnp.sqrt(jnp.sum(v * v)).reshape(1, 1).astype(jnp.float32)   # weight_norm init: g = ||V||_F
    b = jax.random.normal(kb, (1, out_size), dtype=jnp.float32) * 0.1

    params = fcnet_prepare_params(v, g, b)          # one-time parameter prep (hoisted)
    out = jax.block_until_ready(fcnet_forward(x, params, activate="relu"))
    ref = fcnet_reference(x, v, g, b, activate="relu")
    assert out.shape == (B, out_size)
    assert jnp.allclose(out, ref, atol=1e-5, rtol=1e-5), "f32 single-K-step mismatch"

    # --- Test 2: forced tiny tiles to exercise the multi-K accumulator path and the
    #     small-batch deep-weight-prefetch regime (grid 3x3x3).
    B2, in2, out2 = 24, 320, 384
    kx2, kv2, kb2 = jax.random.split(jax.random.PRNGKey(1), 3)
    x2 = jax.random.normal(kx2, (B2, in2), dtype=jnp.float32)
    v2 = jax.random.normal(kv2, (out2, in2), dtype=jnp.float32) * 0.05
    g2 = jnp.sqrt(jnp.sum(v2 * v2)).astype(jnp.float32)
    b2 = jax.random.normal(kb2, (out2,), dtype=jnp.float32) * 0.1
    params2 = fcnet_prepare_params(v2, g2, b2, _tn=128, _tk=128)
    out2_arr = jax.block_until_ready(fcnet_forward(x2, params2, activate="tanh", _tm=8))
    ref2 = fcnet_reference(x2, v2, g2, b2, activate="tanh")
    assert out2_arr.shape == (B2, out2)
    assert jnp.allclose(out2_arr, ref2, atol=5e-4, rtol=5e-4), "multi-K-step mismatch"

    # --- Test 3: bf16 compute path (MXU-native, f32 accumulate/output), loose tolerance.
    params_bf16 = fcnet_prepare_params(v, g, b, compute_dtype=jnp.bfloat16)
    out_bf16 = jax.block_until_ready(fcnet_forward(x, params_bf16, activate="relu"))
    assert jnp.allclose(out_bf16, ref, atol=5e-2, rtol=5e-2), "bf16 mismatch"

    print("KERNEL_OK")
</pallas_src>

<mosaic_0001>
module attributes {stable_mosaic.version = 11 : i64} {
  func.func @_fcnet_kernel_single_k(%arg0: i32, %arg1: i32, %arg2: memref<8x256xf32, #tpu.memory_space<vmem>>, %arg3: memref<256x256xf32, #tpu.memory_space<vmem>>, %arg4: memref<1x1xf32, #tpu.memory_space<smem>>, %arg5: memref<1x256xf32, #tpu.memory_space<vmem>>, %arg6: memref<8x256xf32, #tpu.memory_space<vmem>>) attributes {dimension_semantics = [#tpu.dimension_semantics<parallel>, #tpu.dimension_semantics<parallel>], iteration_bounds = array<i64: 1, 1>, scalar_prefetch = 0 : i64, scratch_operands = 0 : i64, tpu.core_type = #tpu.core_type<tc>, window_params = [{transform_indices = @transform_0, window_bounds = array<i64: 8, 256>}, {transform_indices = @transform_1, window_bounds = array<i64: 256, 256>}, {transform_indices = @transform_2, window_bounds = array<i64: 1, 1>}, {transform_indices = @transform_3, window_bounds = array<i64: 1, 256>}, {transform_indices = @transform_4, window_bounds = array<i64: 8, 256>}]} {
    %c0 = arith.constant 0 : index
    %c0_0 = arith.constant 0 : index
    %0 = vector.load %arg2[%c0, %c0_0] : memref<8x256xf32, #tpu.memory_space<vmem>>, vector<8x256xf32>
    %c0_1 = arith.constant 0 : index
    %c0_2 = arith.constant 0 : index
    %1 = vector.load %arg3[%c0_1, %c0_2] : memref<256x256xf32, #tpu.memory_space<vmem>>, vector<256x256xf32>
    %cst = arith.constant dense<0.000000e+00> : vector<8x256xf32>
    %2 = tpu.matmul %0, %1, %cst {dimension_numbers = #tpu.dot_dimension_numbers<[1], [0], [0], [1], [0, 0, 1, 1], [], []>} : vector<8x256xf32>, vector<256x256xf32>, vector<8x256xf32> -> vector<8x256xf32>
    %c0_3 = arith.constant 0 : index
    %c0_4 = arith.constant 0 : index
    %3 = memref.load %arg4[%c0_3, %c0_4] : memref<1x1xf32, #tpu.memory_space<smem>>
    %4 = vector.broadcast %3 : f32 to vector<8x256xf32>
    %5 = arith.mulf %2, %4 : vector<8x256xf32>
    %c0_5 = arith.constant 0 : index
    %c0_6 = arith.constant 0 : index
    %6 = vector.load %arg5[%c0_5, %c0_6] : memref<1x256xf32, #tpu.memory_space<vmem>>, vector<1x256xf32>
    %7 = vector.broadcast %6 : vector<1x256xf32> to vector<8x256xf32>
    %8 = arith.addf %5, %7 : vector<8x256xf32>
    %cst_7 = arith.constant 0.000000e+00 : f32
    %9 = vector.broadcast %cst_7 : f32 to vector<8x256xf32>
    %10 = arith.maximumf %8, %9 : vector<8x256xf32>
    %c0_8 = arith.constant 0 : index
    %c0_9 = arith.constant 0 : index
    %11 = vector.load %arg6[%c0_8, %c0_9] : memref<8x256xf32, #tpu.memory_space<vmem>>, vector<8x256xf32>
    tpu.vector_store %arg6[%c0_8, %c0_9], %10 {strides = array<i32>} : memref<8x256xf32, #tpu.memory_space<vmem>>, vector<8x256xf32>,
    return
  }
  func.func @transform_0(%arg0: i32, %arg1: i32) -> (i32, i32) {
    %c0_i32 = arith.constant 0 : i32
    %c0_i32_0 = arith.constant 0 : i32
    return %arg0, %c0_i32 : i32, i32
  }
  func.func @transform_1(%arg0: i32, %arg1: i32) -> (i32, i32) {
    %c0_i32 = arith.constant 0 : i32
    %c0_i32_0 = arith.constant 0 : i32
    return %c0_i32, %arg1 : i32, i32
  }
  func.func @transform_2(%arg0: i32, %arg1: i32) -> (i32, i32) {
    %c0_i32 = arith.constant 0 : i32
    %c0_i32_0 = arith.constant 0 : i32
    %c0_i32_1 = arith.constant 0 : i32
    return %c0_i32, %c0_i32_0 : i32, i32
  }
  func.func @transform_3(%arg0: i32, %arg1: i32) -> (i32, i32) {
    %c0_i32 = arith.constant 0 : i32
    %c0_i32_0 = arith.constant 0 : i32
    return %c0_i32, %arg1 : i32, i32
  }
  func.func @transform_4(%arg0: i32, %arg1: i32) -> (i32, i32) {
    %c0_i32 = arith.constant 0 : i32
    return %arg0, %arg1 : i32, i32
  }
}

</mosaic_0001>

<bundles_post_ra>
// kernel: tpu_custom_call.1
= control target key start
LH: loop header
LB: loop body
LE: loop exit
PB: predicated region body
PF: predicated region fallthrough
CT: control target
= control target key end

     0   :  { %10 = vsyncpa [#allocation4], 0  ;;  %s440_s0 = inlined_call_operand.hbm [shape: f32[8,256], index: 0, kind: input, shape index: {}]   ;;  %s441_s1 = inlined_call_operand.hbm [shape: f32[256,256], index: 1, kind: input, shape index: {}]   ;;  %s442_s2 = inlined_call_operand.<no memory space> [shape: f32[1,1], index: 2, kind: input, shape index: {}]   ;;  %s443_s3 = inlined_call_operand.vmem [shape: f32[1,256], index: 3, kind: input, shape index: {}]   ;;  %s444_s4 = inlined_call_operand.hbm [shape: f32[8,256], index: 4, kind: output, shape index: {}]  }
   0x1   :  { %11 = vsyncpa [#allocation7], 0 }
   0x2   :  { %12 = vsyncpa [#allocation5], 0  ;;  %s361_s15 = smov [#allocation3]   ;;  %s362_s17 = smov [#allocation6]  }
   0x3   :  { %s19_s16 = sshll.u32 %s361_s15, 4  ;;  %s28_s18 = sshll.u32 %s362_s17, 4  ;;  %s20_s16 = int_to_ptr.vmem [resolvable:$true] %s19_s16  ;;  %s391_s18 = int_to_ptr.vmem [resolvable:$true] %s28_s18 }
   0x4   :  { %s289_s21 = scalar_lea.hbm %s440_s0, 256 }
   0x5   :  { %p290_p0 = scmp.ne.s32.totalorder %s440_s0, %s289_s21  ;;  %p293_p1 = scmp.lt.u32.totalorder %s289_s21, %s440_s0 }
   0x7   :  { %p295_p2 = pnand %p293_p1, %p290_p0 }
   0x9   :  { %298 = shalt.err (!%p295_p2)
}
   0xa   :  { %s299_s26 = scalar_lea.vmem %s20_s16, 256  ;;  %p304_p4 = scmp.lt.s32.totalorder %s20_s16, %s20_s16 }
   0xb   :  { %p300_p3 = scmp.ne.s32.totalorder %s20_s16, %s299_s26  ;;  %p305_p5 = scmp.lt.s32.totalorder %s299_s26, %s299_s26 }
   0xd   :  { %p306_p6 = por %p305_p5, %p304_p4 }
   0xf   :  { %p307_p7 = pnand %p306_p6, %p300_p3 }
  0x11   :  { %310 = shalt.err (!%p307_p7)
}
  0x12   :  { %22 = dma.hbm_to_vmem [thread:$0]  %s440_s0, 256, %s20_s16, [#allocation4]  }
  0x13   :  { %s311_s5 = scalar_lea.hbm %s441_s1, 8192 }
  0x14   :  { %p312_p8 = scmp.ne.s32.totalorder %s441_s1, %s311_s5  ;;  %p315_p9 = scmp.lt.u32.totalorder %s311_s5, %s441_s1 }
  0x16   :  { %p317_p10 = pnand %p315_p9, %p312_p8 }
  0x18   :  { %320 = shalt.err (!%p317_p10)
}
  0x19   :  { %s321_s10 = scalar_lea.vmem %s391_s18, 8192  ;;  %p326_p12 = scmp.lt.s32.totalorder %s391_s18, %s391_s18 }
  0x1a   :  { %p322_p11 = scmp.ne.s32.totalorder %s391_s18, %s321_s10  ;;  %p327_p13 = scmp.lt.s32.totalorder %s321_s10, %s321_s10 }
  0x1c   :  { %p328_p0 = por %p327_p13, %p326_p12 }
  0x1e   :  { %p329_p1 = pnand %p328_p0, %p322_p11 }
  0x20   :  { %332 = shalt.err (!%p329_p1)
}
  0x21   :  { %s363_s0 = smov 256   ;;  %s364_s11 = smov 16  }
  0x22   :  { %34 = dma.hbm_to_vmem [thread:$0]  %s441_s1, 8192, %s391_s18, [#allocation7], %s363_s0, %s363_s0, %s364_s11  }
  0x23   :  { %355 = dma.done.wait [#allocation4], 256  }
  0x24   :  { %356 = vsyncadd [#allocation4], 4294967040 }
  0x25   :  { %357 = dma.done.wait [#allocation7], 8192  }
  0x26   :  { %358 = vsyncadd [#allocation7], 4294959104  ;;  %v48_v0 = vld [vmem:[#allocation6 + $0x8] sm:$0xff]  ;;  %v50_v1 = vld [vmem:[#allocation6 + $0x18] sm:$0xff]  ;;  %s365_s17 = smov [#allocation8]  }
  0x27   :  { %v47_v2 = vld [vmem:[#allocation6] sm:$0xff]  ;;  %v220_v3 = vpack.c.bf16 %v50_v1, %v48_v0  ;;  %v49_v4 = vld [vmem:[#allocation6 + $0x10] sm:$0xff]  ;;  %v52_v5 = vld [vmem:[#allocation6 + $0x28] sm:$0xff]  ;;  %s210_s18 = sshll.u32 %s365_s17, 4  ;;  %s211_s18 = int_to_ptr.vmem [resolvable:$true] %s210_s18 }
  0x28   :  { %v54_v6 = vld [vmem:[#allocation6 + $0x38] sm:$0xff]  ;;  %v222_v7 = vpack.c.bf16 %v49_v4, %v47_v2  ;;  %v51_v9 = vld [vmem:[#allocation6 + $0x20] sm:$0xff]  ;;  %v53_v10 = vld [vmem:[#allocation6 + $0x30] sm:$0xff]  ;;  %p338_p3 = scmp.lt.s32.totalorder %s211_s18, %s211_s18 }
  0x29   :  { %v224_v8 = vpack.c.bf16 %v54_v6, %v52_v5  ;;  %v56_v11 = vld [vmem:[#allocation6 + $0x48] sm:$0xff]  ;;  %221 = vmatprep.subr.bf16.mxu0 %v220_v3  ;;  %v58_v12 = vld [vmem:[#allocation6 + $0x58] sm:$0xff]  ;;  %v226_v13 = vpack.c.bf16 %v53_v10, %v51_v9  ;;  %v55_v15 = vld [vmem:[#allocation6 + $0x40] sm:$0xff] }
  0x2a   :  { %223 = vmatpush1.bf16.msra.mxu0 %v222_v7  ;;  %v228_v14 = vpack.c.bf16 %v58_v12, %v56_v11  ;;  %v57_v16 = vld [vmem:[#allocation6 + $0x50] sm:$0xff]  ;;  %v60_v17 = vld [vmem:[#allocation6 + $0x68] sm:$0xff]  ;;  %v62_v18 = vld [vmem:[#allocation6 + $0x78] sm:$0xff] }
  0x2b   :  { %225 = vmatprep.subr.bf16.mxu0 %v224_v8  ;;  %v230_v19 = vpack.c.bf16 %v57_v16, %v55_v15  ;;  %v232_v20 = vpack.c.bf16 %v62_v18, %v60_v17  ;;  %v59_v21 = vld [vmem:[#allocation6 + $0x60] sm:$0xff]  ;;  %v61_v22 = vld [vmem:[#allocation6 + $0x70] sm:$0xff]  ;;  %v64_v23 = vld [vmem:[#allocation6 + $0x88] sm:$0xff] }
  0x2c   :  { %v66_v24 = vld [vmem:[#allocation6 + $0x98] sm:$0xff]  ;;  %v234_v25 = vpack.c.bf16 %v61_v22, %v59_v21  ;;  %v63_v27 = vld [vmem:[#allocation6 + $0x80] sm:$0xff]  ;;  %v65_v28 = vld [vmem:[#allocation6 + $0x90] sm:$0xff] }
  0x2d   :  { %v236_v26 = vpack.c.bf16 %v66_v24, %v64_v23  ;;  %v68_v29 = vld [vmem:[#allocation6 + $0xa8] sm:$0xff]  ;;  %v70_v30 = vld [vmem:[#allocation6 + $0xb8] sm:$0xff]  ;;  %v238_v31 = vpack.c.bf16 %v65_v28, %v63_v27  ;;  %v67_v33 = vld [vmem:[#allocation6 + $0xa0] sm:$0xff] }
  0x2e   :  { %227 = vmatpush1.bf16.msra.mxu0 %v226_v13  ;;  %v240_v32 = vpack.c.bf16 %v70_v30, %v68_v29  ;;  %v69_v34 = vld [vmem:[#allocation6 + $0xb0] sm:$0xff]  ;;  %v72_v35 = vld [vmem:[#allocation6 + $0xc8] sm:$0xff]  ;;  %v74_v36 = vld [vmem:[#allocation6 + $0xd8] sm:$0xff] }
  0x2f   :  { %229 = vmatprep.subr.bf16.mxu0 %v228_v14  ;;  %v242_v37 = vpack.c.bf16 %v69_v34, %v67_v33  ;;  %v244_v38 = vpack.c.bf16 %v74_v36, %v72_v35  ;;  %v71_v39 = vld [vmem:[#allocation6 + $0xc0] sm:$0xff]  ;;  %v73_v40 = vld [vmem:[#allocation6 + $0xd0] sm:$0xff]  ;;  %v46_v41 = vld [vmem:[#allocation3 + $0x8] sm:$0xff]  ;;  %v188_v34 = vlaneseq }
  0x30   :  { %v76_v42 = vld [vmem:[#allocation6 + $0xe8] sm:$0xff]  ;;  %v78_v43 = vld [vmem:[#allocation6 + $0xf8] sm:$0xff]  ;;  %175 = vmatprep.mubr.f32.mxu0 %v46_v41  ;;  %v246_v44 = vpack.c.bf16 %v73_v40, %v71_v39  ;;  %v75_v46 = vld [vmem:[#allocation6 + $0xe0] sm:$0xff]  ;;  %v183_v39 = vstv %s442_s2 }
  0x31   :  { %v248_v45 = vpack.c.bf16 %v78_v43, %v76_v42  ;;  %v77_v47 = vld [vmem:[#allocation6 + $0xf0] sm:$0xff]  ;;  %v80_v48 = vld [vmem:[#allocation6 + $0x108] sm:$0xff]  ;;  %v82_v49 = vld [vmem:[#allocation6 + $0x118] sm:$0xff]  ;;  %v189_v35 = vshrl.u32 %v188_v34, 7 }
  0x32   :  { %231 = vmatpush1.bf16.msra.mxu0 %v230_v19  ;;  %v250_v50 = vpack.c.bf16 %v77_v47, %v75_v46  ;;  %v252_v51 = vpack.c.bf16 %v82_v49, %v80_v48  ;;  %v79_v52 = vld [vmem:[#allocation6 + $0x100] sm:$0xff]  ;;  %v81_v53 = vld [vmem:[#allocation6 + $0x110] sm:$0xff]  ;;  %v84_v54 = vld [vmem:[#allocation6 + $0x128] sm:$0xff] }
  0x33   :  { %233 = vmatprep.subr.bf16.mxu0 %v232_v20  ;;  %v86_v55 = vld [vmem:[#allocation6 + $0x138] sm:$0xff]  ;;  %v254_v56 = vpack.c.bf16 %v81_v53, %v79_v52  ;;  %v83_v58 = vld [vmem:[#allocation6 + $0x120] sm:$0xff]  ;;  %v85_v59 = vld [vmem:[#allocation6 + $0x130] sm:$0xff]  ;;  %v190_v36 = vsub.s32 0, %v189_v35 }
  0x34   :  { %v256_v57 = vpack.c.bf16 %v86_v55, %v84_v54  ;;  %v88_v60 = vld [vmem:[#allocation6 + $0x148] sm:$0xff]  ;;  %v90_v61 = vld [vmem:[#allocation6 + $0x158] sm:$0xff]  ;;  %v258_v62 = vpack.c.bf16 %v85_v59, %v83_v58  ;;  %v87_v0 = vld [vmem:[#allocation6 + $0x140] sm:$0xff] }
  0x35   :  { %v260_v63 = vpack.c.bf16 %v90_v61, %v88_v60  ;;  %v89_v1 = vld [vmem:[#allocation6 + $0x150] sm:$0xff]  ;;  %v92_v2 = vld [vmem:[#allocation6 + $0x168] sm:$0xff]  ;;  %v94_v3 = vld [vmem:[#allocation6 + $0x178] sm:$0xff] }
  0x36   :  { %235 = vmatpush1.bf16.msra.mxu0 %v234_v25  ;;  %v262_v4 = vpack.c.bf16 %v89_v1, %v87_v0  ;;  %v264_v5 = vpack.c.bf16 %v94_v3, %v92_v2  ;;  %v91_v6 = vld [vmem:[#allocation6 + $0x160] sm:$0xff]  ;;  %v93_v7 = vld [vmem:[#allocation6 + $0x170] sm:$0xff]  ;;  %v96_v8 = vld [vmem:[#allocation6 + $0x188] sm:$0xff] }
  0x37   :  { %237 = vmatprep.subr.bf16.mxu0 %v236_v26  ;;  %v98_v9 = vld [vmem:[#allocation6 + $0x198] sm:$0xff]  ;;  %v266_v10 = vpack.c.bf16 %v93_v7, %v91_v6  ;;  %v95_v12 = vld [vmem:[#allocation6 + $0x180] sm:$0xff]  ;;  %v97_v13 = vld [vmem:[#allocation6 + $0x190] sm:$0xff] }
  0x38   :  { %v268_v11 = vpack.c.bf16 %v98_v9, %v96_v8  ;;  %v100_v14 = vld [vmem:[#allocation6 + $0x1a8] sm:$0xff]  ;;  %v102_v15 = vld [vmem:[#allocation6 + $0x1b8] sm:$0xff]  ;;  %v270_v16 = vpack.c.bf16 %v97_v13, %v95_v12  ;;  %v99_v18 = vld [vmem:[#allocation6 + $0x1a0] sm:$0xff] }
  0x39   :  { %v272_v17 = vpack.c.bf16 %v102_v15, %v100_v14  ;;  %v101_v19 = vld [vmem:[#allocation6 + $0x1b0] sm:$0xff]  ;;  %v104_v20 = vld [vmem:[#allocation6 + $0x1c8] sm:$0xff]  ;;  %v106_v21 = vld [vmem:[#allocation6 + $0x1d8] sm:$0xff] }
  0x3a   :  { %239 = vmatpush1.bf16.msra.mxu0 %v238_v31  ;;  %v274_v22 = vpack.c.bf16 %v101_v19, %v99_v18  ;;  %v276_v23 = vpack.c.bf16 %v106_v21, %v104_v20  ;;  %v103_v24 = vld [vmem:[#allocation6 + $0x1c0] sm:$0xff]  ;;  %v105_v25 = vld [vmem:[#allocation6 + $0x1d0] sm:$0xff]  ;;  %v108_v26 = vld [vmem:[#allocation6 + $0x1e8] sm:$0xff] }
  0x3b   :  { %241 = vmatprep.subr.bf16.mxu0 %v240_v32  ;;  %v110_v27 = vld [vmem:[#allocation6 + $0x1f8] sm:$0xff]  ;;  %v278_v28 = vpack.c.bf16 %v105_v25, %v103_v24  ;;  %v107_v30 = vld [vmem:[#allocation6 + $0x1e0] sm:$0xff]  ;;  %v109_v31 = vld [vmem:[#allocation6 + $0x1f0] sm:$0xff] }
  0x3c   :  { %v280_v29 = vpack.c.bf16 %v110_v27, %v108_v26  ;;  %v282_v32 = vpack.c.bf16 %v109_v31, %v107_v30  ;;  %v45_v33 = vld [vmem:[#allocation3] sm:$0xff] }
  0x3e   :  { %243 = vmatpush1.bf16.msra.mxu0 %v242_v37  ;;  %v186_v37 = vld [vmem:[%s443_s3] sm:$0x3]  ;;  %s333_s3 = scalar_lea.vmem %s211_s18, 256 }
  0x3f   :  { %245 = vmatprep.subr.bf16.mxu0 %v244_v38  ;;  %v194_v38 = vsub.s32 1, %v189_v35  ;;  %v191_v40 = vrot.slane %v186_v37, %v190_v36  ;;  %p334_p2 = scmp.ne.s32.totalorder %s211_s18, %s333_s3  ;;  %p339_p4 = scmp.lt.s32.totalorder %s333_s3, %s333_s3 }
  0x41   :  { %v195_v42 = vrot.slane %v186_v37, %v194_v38  ;;  %p340_p5 = por %p339_p4, %p338_p3 }
  0x42   :  { %247 = vmatpush1.bf16.msra.mxu0 %v246_v44 }
  0x43   :  { %249 = vmatprep.subr.bf16.mxu0 %v248_v45  ;;  %p341_p6 = pnand %p340_p5, %p334_p2 }
  0x46   :  { %251 = vmatpush1.bf16.msra.mxu0 %v250_v50 }
  0x47   :  { %253 = vmatprep.subr.bf16.mxu0 %v252_v51 }
  0x4a   :  { %255 = vmatpush1.bf16.msra.mxu0 %v254_v56 }
  0x4b   :  { %257 = vmatprep.subr.bf16.mxu0 %v256_v57 }
  0x4e   :  { %259 = vmatpush1.bf16.msra.mxu0 %v258_v62 }
  0x4f   :  { %261 = vmatprep.subr.bf16.mxu0 %v260_v63 }
  0x52   :  { %263 = vmatpush1.bf16.msra.mxu0 %v262_v4 }
  0x53   :  { %265 = vmatprep.subr.bf16.mxu0 %v264_v5 }
  0x56   :  { %267 = vmatpush1.bf16.msra.mxu0 %v266_v10 }
  0x57   :  { %269 = vmatprep.subr.bf16.mxu0 %v268_v11 }
  0x5a   :  { %271 = vmatpush1.bf16.msra.mxu0 %v270_v16 }
  0x5b   :  { %273 = vmatprep.subr.bf16.mxu0 %v272_v17 }
  0x5e   :  { %275 = vmatpush1.bf16.msra.mxu0 %v274_v22 }
  0x5f   :  { %277 = vmatprep.subr.bf16.mxu0 %v276_v23 }
  0x62   :  { %279 = vmatpush1.bf16.msra.mxu0 %v278_v28 }
  0x63   :  { %281 = vmatprep.subr.bf16.mxu0 %v280_v29 }
  0x66   :  { %283 = vmatpush1.bf16.msra.mxu0 %v282_v32 }
  0x69   :  { %176 = vmatmul.mubr.f32.vlgmr.msra.gmra.mrb[0].mxu0 %v45_v33 }
 0x13c   :  { %v177_v41 = vpop.f32.mrb[0].mxu0 }
 0x13d   :  { %v184_v43 = vmul.f32 %v183_v39, %v177_v41  ;;  %v179_v44 = vpop.f32.mrb[1].mxu0 }
 0x13e   :  { %v185_v45 = vmul.f32 %v183_v39, %v179_v44 }
 0x13f   :  { %v198_v46 = vadd.f32 %v191_v40, %v184_v43 }
 0x140   :  { %v199_v47 = vadd.f32 %v195_v42, %v185_v45 }
 0x141   :  { %v200_v48 = vmax.f32 %v198_v46, 0.0 }
 0x142   :  { %v201_v49 = vmax.f32 %v199_v47, 0.0 }
 0x143   :  { %202 = vst [vmem:[#allocation8] sm:$0xff] %v200_v48 }
 0x144   :  { %203 = vst [vmem:[#allocation8 + $0x8] sm:$0xff] %v201_v49 }
 0x145   :  { %344 = shalt.err (!%p341_p6)
}
 0x146   :  { %s345_s20 = scalar_lea.hbm %s444_s4, 256 }
 0x147   :  { %p346_p7 = scmp.ne.s32.totalorder %s444_s4, %s345_s20  ;;  %p349_p8 = scmp.lt.u32.totalorder %s345_s20, %s444_s4 }
 0x149   :  { %p351_p9 = pnand %p349_p8, %p346_p7 }
 0x14b   :  { %354 = shalt.err (!%p351_p9)
}
 0x14c   :  { %213 = dma.vmem_to_hbm [thread:$0]  %s211_s18, 256, %s444_s4, [#allocation5]  }
 0x14d   :  { %359 = dma.done.wait [#allocation5], 256  }
 0x14e   :  { %360 = vsyncadd [#allocation5], 4294967040 }
 0x14f   :  { %217 = vsyncpa [#allocation4], 1 }
 0x150   :  { %218 = vsyncpa [#allocation7], 1 }
 0x151   :  { %219 = vsyncpa [#allocation5], 1 }

</bundles_post_ra>
